<compile_context>
chip_gen: v6e
topology: v6e:2x2x1
jax: 0.10.0
libtpu: 0.0.40
codegen_flags: <defaults>
</compile_context>

<pallas_src>
import jax
import jax.numpy as jnp
from jax.experimental import pallas as pl
from jax.experimental.pallas import tpu as pltpu

LANES = 128
TARGET_BLOCK_BYTES = 4 << 20          # ~4 MiB input block (dtype-scaled row count)
SMALL_SINGLE_BLOCK_BYTES = 512 << 10  # below this, one block (latency-bound anyway)
MIN_GRID_STEPS = 4                    # keep >= 4 steps on mid-size tensors for DMA overlap
VMEM_LIMIT_BYTES = 32 << 20           # 2 bufs x (in + out) x 4 MiB = 16 MiB, plus headroom


def _sigmoid_kernel(gamma_ref, x_ref, o_ref):
    # sigmoid(g*x) = 0.5 * tanh(0.5*g*x) + 0.5  -> single EUP push per vreg (vs exp + divide).
    half_gamma = 0.5 * gamma_ref[0]                 # SMEM scalar, hoisted once per grid step
    x = x_ref[...].astype(jnp.float32)              # in-register upcast (VPU)
    o_ref[...] = (0.5 * jnp.tanh(half_gamma * x) + 0.5).astype(o_ref.dtype)


def _jnp_sigmoid(x, gamma_scalar):
    # Tiny jnp epilogue for the <128-element tail / sub-128 tensors. Same tanh form.
    z = gamma_scalar * x.astype(jnp.float32)
    return 0.5 * jnp.tanh(0.5 * z) + 0.5


def _pick_block_rows(rows: int, itemsize: int) -> int:
    """Dtype-scaled block rows: ~4 MiB/block, >= MIN_GRID_STEPS blocks when sizeable."""
    if rows * LANES * itemsize <= SMALL_SINGLE_BLOCK_BYTES:
        return rows                                  # single block == full dim (always legal)
    sub = max(8, 32 // itemsize)                     # packed sublane multiple: 8 f32, 16 bf16
    target_rows = max(sub, TARGET_BLOCK_BYTES // (LANES * itemsize))
    cap = -(-rows // MIN_GRID_STEPS)                 # ceil(rows / MIN_GRID_STEPS)
    tr = min(target_rows, cap)
    tr = max(sub, (tr // sub) * sub)                 # sublane-aligned (needed when tr < rows)
    return min(tr, rows)


def _dim_semantics():
    """CORE_PARALLEL on dual-TensorCore chips (v7x); PARALLEL elsewhere (no-op on 1 TC)."""
    kind = ""
    try:
        kind = jax.devices()[0].device_kind.lower()
    except Exception:
        pass
    if "7" in kind and hasattr(pltpu, "CORE_PARALLEL"):
        return (pltpu.CORE_PARALLEL,)
    return (pltpu.PARALLEL,)


def sigmoid_pallas(a: jax.Array, gamma: jax.Array) -> jax.Array:
    """Elementwise logistic 1/(1+exp(-gamma*a)) with scalar gamma; `a` may be any shape."""
    orig_shape = a.shape
    dtype = a.dtype
    total = int(a.size)
    gamma_f32 = jnp.asarray(gamma, dtype=jnp.float32).reshape(-1)[0]

    if total == 0:
        return a

    flat = jnp.ravel(a)
    aligned = (total // LANES) * LANES
    rem = total - aligned

    if aligned == 0:
        # Sub-128 tensor: not worth a kernel launch.
        return _jnp_sigmoid(flat, gamma_f32).astype(dtype).reshape(orig_shape)

    main = flat[:aligned] if rem else flat           # no-op for 128-aligned sizes
    rows = aligned // LANES
    x2d = main.reshape(rows, LANES)

    itemsize = jnp.dtype(dtype).itemsize
    tr = _pick_block_rows(rows, itemsize)
    grid = (pl.cdiv(rows, tr),)

    gamma_arr = gamma_f32.reshape((1,))

    cost = pl.CostEstimate(
        flops=3 * aligned,
        transcendentals=aligned,
        bytes_accessed=2 * aligned * itemsize,
    )

    out2d = pl.pallas_call(
        _sigmoid_kernel,
        out_shape=jax.ShapeDtypeStruct((rows, LANES), dtype),
        grid_spec=pltpu.PrefetchScalarGridSpec(
            num_scalar_prefetch=0,
            grid=grid,
            in_specs=[
                pl.BlockSpec(memory_space=pltpu.SMEM),        # gamma scalar, whole, SMEM
                pl.BlockSpec((tr, LANES), lambda i: (i, 0)),  # x tile
            ],
            out_specs=pl.BlockSpec((tr, LANES), lambda i: (i, 0)),
        ),
        compiler_params=pltpu.CompilerParams(
            dimension_semantics=_dim_semantics(),
            vmem_limit_bytes=VMEM_LIMIT_BYTES,
        ),
        cost_estimate=cost,
    )(gamma_arr, x2d)

    out_flat = out2d.reshape(-1)
    if rem:
        tail = _jnp_sigmoid(flat[aligned:], gamma_f32).astype(dtype)
        out_flat = jnp.concatenate([out_flat, tail])
    return out_flat.reshape(orig_shape)


def _ref(a, gamma):
    # Reference in the original exp form (matches the PyTorch module exactly).
    return 1.0 / (1.0 + jnp.exp(-gamma * a.astype(jnp.float32)))


if __name__ == "__main__":
    key = jax.random.PRNGKey(0)
    gamma = jnp.array([5.0], dtype=jnp.float32)  # nn.Parameter(torch.Tensor([5.0]))

    # 1) Primary small NCHW case (matches the PyTorch module usage); 128-aligned total.
    x = jax.random.normal(key, (2, 4, 16, 16), dtype=jnp.float32)
    out = jax.block_until_ready(sigmoid_pallas(x, gamma))
    ref = _ref(x, gamma[0])
    assert out.shape == x.shape and out.dtype == x.dtype
    assert jnp.max(jnp.abs(out - ref)) < 5e-6

    # 2) Odd total (exercises the aligned-prefix kernel + jnp tail epilogue path).
    k1, k2 = jax.random.split(key)
    x_odd = jax.random.normal(k1, (3, 5, 17, 19), dtype=jnp.float32)
    out_odd = jax.block_until_ready(sigmoid_pallas(x_odd, gamma))
    assert out_odd.shape == x_odd.shape and out_odd.dtype == x_odd.dtype
    assert jnp.max(jnp.abs(out_odd - _ref(x_odd, gamma[0]))) < 5e-6

    # 3) Larger bf16 case (exercises the multi-block, double-buffered grid).
    x_big = jax.random.normal(k2, (4, 8, 128, 128), dtype=jnp.bfloat16)
    out_big = jax.block_until_ready(sigmoid_pallas(x_big, gamma))
    assert out_big.dtype == jnp.bfloat16 and out_big.shape == x_big.shape
    err = jnp.max(jnp.abs(out_big.astype(jnp.float32) - _ref(x_big, gamma[0])))
    assert err < 1e-2  # bf16 storage tolerance

    print("KERNEL_OK")
</pallas_src>

<mosaic_0001>
module attributes {stable_mosaic.version = 11 : i64} {
  func.func @_sigmoid_kernel(%arg0: i32, %arg1: memref<1xf32, #tpu.memory_space<smem>>, %arg2: memref<16x128xf32, #tpu.memory_space<vmem>>, %arg3: memref<16x128xf32, #tpu.memory_space<vmem>>) attributes {dimension_semantics = [#tpu.dimension_semantics<parallel>], iteration_bounds = array<i64: 1>, scalar_prefetch = 0 : i64, scratch_operands = 0 : i64, tpu.core_type = #tpu.core_type<tc>, window_params = [{transform_indices = @transform_0, window_bounds = array<i64: 1>}, {transform_indices = @transform_1, window_bounds = array<i64: 16, 128>}, {transform_indices = @transform_2, window_bounds = array<i64: 16, 128>}]} {
    %c0 = arith.constant 0 : index
    %0 = memref.load %arg1[%c0] : memref<1xf32, #tpu.memory_space<smem>>
    %cst = arith.constant 5.000000e-01 : f32
    %1 = arith.mulf %cst, %0 : f32
    %c0_0 = arith.constant 0 : index
    %c0_1 = arith.constant 0 : index
    %2 = vector.load %arg2[%c0_0, %c0_1] : memref<16x128xf32, #tpu.memory_space<vmem>>, vector<16x128xf32>
    %3 = vector.broadcast %1 : f32 to vector<16x128xf32>
    %4 = arith.mulf %3, %2 : vector<16x128xf32>
    %5 = math.tanh %4 : vector<16x128xf32>
    %cst_2 = arith.constant 5.000000e-01 : f32
    %6 = vector.broadcast %cst_2 : f32 to vector<16x128xf32>
    %7 = arith.mulf %6, %5 : vector<16x128xf32>
    %cst_3 = arith.constant 5.000000e-01 : f32
    %8 = vector.broadcast %cst_3 : f32 to vector<16x128xf32>
    %9 = arith.addf %7, %8 : vector<16x128xf32>
    %c0_4 = arith.constant 0 : index
    %c0_5 = arith.constant 0 : index
    %10 = vector.load %arg3[%c0_4, %c0_5] : memref<16x128xf32, #tpu.memory_space<vmem>>, vector<16x128xf32>
    tpu.vector_store %arg3[%c0_4, %c0_5], %9 {strides = array<i32>} : memref<16x128xf32, #tpu.memory_space<vmem>>, vector<16x128xf32>,
    return
  }
  func.func @transform_0(%arg0: i32) -> i32 {
    %c0_i32 = arith.constant 0 : i32
    %c0_i32_0 = arith.constant 0 : i32
    return %c0_i32 : i32
  }
  func.func @transform_1(%arg0: i32) -> (i32, i32) {
    %c0_i32 = arith.constant 0 : i32
    %c0_i32_0 = arith.constant 0 : i32
    return %arg0, %c0_i32 : i32, i32
  }
  func.func @transform_2(%arg0: i32) -> (i32, i32) {
    %c0_i32 = arith.constant 0 : i32
    %c0_i32_0 = arith.constant 0 : i32
    return %arg0, %c0_i32 : i32, i32
  }
}

</mosaic_0001>

<bundles_post_ra>
// kernel: tpu_custom_call.1
= control target key start
LH: loop header
LB: loop body
LE: loop exit
PB: predicated region body
PF: predicated region fallthrough
CT: control target
= control target key end

     0   :  { %8 = vsyncpa [#allocation4], 0  ;;  %s145_s0 = inlined_call_operand.<no memory space> [shape: f32[1], index: 0, kind: input, shape index: {}]   ;;  %s146_s1 = inlined_call_operand.hbm [shape: f32[16,128], index: 1, kind: input, shape index: {}]   ;;  %s147_s2 = inlined_call_operand.hbm [shape: f32[16,128], index: 2, kind: output, shape index: {}]  }
   0x1   :  { %9 = vsyncpa [#allocation5], 0  ;;  %s111_s9 = smov [#allocation3]  }
   0x2   :  { %s17_s10 = sshll.u32 %s111_s9, 4  ;;  %s18_s10 = int_to_ptr.vmem [resolvable:$true] %s17_s10 }
   0x3   :  { %s75_s11 = scalar_lea.vmem %s18_s10, 256  ;;  %p80_p1 = scmp.lt.s32.totalorder %s18_s10, %s18_s10 }
   0x4   :  { %p76_p0 = scmp.ne.s32.totalorder %s18_s10, %s75_s11  ;;  %p81_p2 = scmp.lt.s32.totalorder %s75_s11, %s75_s11 }
   0x6   :  { %p82_p3 = por %p81_p2, %p80_p1 }
   0x8   :  { %p83_p4 = pnand %p82_p3, %p76_p0 }
   0xa   :  { %86 = shalt.err (!%p83_p4)
}
   0xb   :  { %s112_s12 = smov 128   ;;  %s113_s13 = smov 8  }
   0xc   :  { %23 = dma.hbm_to_vmem [thread:$0]  %s146_s1, 256, %s18_s10, [#allocation4], %s112_s12, %s112_s12, %s113_s13  }
   0xd   :  { %107 = dma.done.wait [#allocation4], 256  }
   0xe   :  { %108 = vsyncadd [#allocation4], 4294967040  ;;  %s28_s18 = smul.f32 0.5, %s145_s0  ;;  %v29_v1 = vld [vmem:[#allocation3] sm:$0xff]  ;;  %v30_v2 = vld [vmem:[#allocation3 + $0x8] sm:$0xff]  ;;  %s114_s19 = smov [#allocation6]  }
   0xf   :  { %s47_s20 = sshll.u32 %s114_s19, 4  ;;  %s48_s20 = int_to_ptr.vmem [resolvable:$true] %s47_s20 }
  0x10   :  { %v31_v0 = vstv %s28_s18  ;;  %s87_s1 = scalar_lea.vmem %s48_s20, 256  ;;  %p92_p6 = scmp.lt.s32.totalorder %s48_s20, %s48_s20 }
  0x11   :  { %v32_v3 = vmul.f32 %v31_v0, %v29_v1  ;;  %v33_v4 = vmul.f32 %v31_v0, %v30_v2  ;;  %p88_p5 = scmp.ne.s32.totalorder %s48_s20, %s87_s1  ;;  %p93_p7 = scmp.lt.s32.totalorder %s87_s1, %s87_s1 }
  0x13   :  { %63 = vtanh.f32 %v32_v3  ;;  %p94_p8 = por %p93_p7, %p92_p6 }
  0x14   :  { %65 = vtanh.f32 %v33_v4 }
  0x15   :  { %p95_p9 = pnand %p94_p8, %p88_p5 }
  0x20   :  { %v64_v5 = vpop.eup %63 }
  0x21   :  { %v66_v6 = vpop.eup %65  ;;  %v36_v7 = vmul.f32 0.5, %v64_v5 }
  0x22   :  { %v37_v8 = vmul.f32 0.5, %v66_v6 }
  0x23   :  { %v38_v9 = vadd.f32 0.5, %v36_v7 }
  0x24   :  { %v39_v10 = vadd.f32 0.5, %v37_v8 }
  0x25   :  { %40 = vst [vmem:[#allocation6] sm:$0xff] %v38_v9 }
  0x26   :  { %41 = vst [vmem:[#allocation6 + $0x8] sm:$0xff] %v39_v10 }
  0x27   :  { %98 = shalt.err (!%p95_p9)
}
  0x28   :  { %53 = dma.vmem_to_hbm [thread:$0]  %s48_s20, 256, %s147_s2, [#allocation5], %s112_s12, %s112_s12, %s113_s13  }
  0x29   :  { %109 = dma.done.wait [#allocation5], 256  }
  0x2a   :  { %110 = vsyncadd [#allocation5], 4294967040 }
  0x2b   :  { %57 = vsyncpa [#allocation4], 1 }
  0x2c   :  { %58 = vsyncpa [#allocation5], 1 }

</bundles_post_ra>
